<compile_context>
chip_gen: v6e
topology: v6e:2x2x1
jax: 0.10.0
libtpu: 0.0.40
codegen_flags: <defaults>
</compile_context>

<pallas_src>
import math

import jax
import jax.numpy as jnp
from jax.experimental import pallas as pl
from jax.experimental.pallas import tpu as pltpu


# ----------------------------- config (small) -----------------------------
B = 2                 # batch
S = 8                 # sequence length
HIDDEN = 32           # hidden_size
INTER = 128           # intermediate_size (4 * hidden, lane-dense contracting dim)
EPS = 1e-12           # layer_norm_eps (BERT default)
DROPOUT_P = 0.1       # hidden_dropout_prob; eval mode -> identity


# ------------------------- fused BertOutput kernel -------------------------
def _bert_output_kernel(x_ref, res_ref, w_ref, p_ref, o_ref):
    # x_ref   : (rt, INTER)    f32 intermediate activations (row tile)
    # res_ref : (rt, HIDDEN)   f32 residual input_tensor   (row tile)
    # w_ref   : (INTER, HIDDEN) bf16 dense weight, pre-transposed: y = x @ W
    # p_ref   : (3, HIDDEN)    f32 packed params: row 0 = dense bias,
    #                          row 1 = LN gamma, row 2 = LN beta
    # o_ref   : (rt, HIDDEN)   f32 output (row tile)

    # Dense projection on the MXU: bf16 operands, f32 accumulation.
    x = x_ref[...].astype(jnp.bfloat16)
    y = jnp.dot(x, w_ref[...], preferred_element_type=jnp.float32)

    bias = p_ref[0:1, :]
    gamma = p_ref[1:2, :]
    beta = p_ref[2:3, :]

    # TODO(synk): Dropout(p=0.1) is identity in eval mode; training-mode parity
    # would need pltpu.prng_seed / prng_random_bits masking + 1/(1-p) scaling.

    # Bias + residual add, in f32 (VPU).
    y = y + bias + res_ref[...]

    # LayerNorm over hidden: one-pass moments. The two cross-lane reductions
    # are independent, so they overlap in the XLU slot instead of serializing
    # through a full VPU centering pass.
    h_inv = 1.0 / y.shape[-1]
    s1 = jnp.sum(y, axis=-1, keepdims=True)
    s2 = jnp.sum(y * y, axis=-1, keepdims=True)
    mean = s1 * h_inv
    var = s2 * h_inv - mean * mean
    inv = jax.lax.rsqrt(var + EPS)               # EUP slot, keeps VALU clear

    o_ref[...] = ((y - mean) * inv) * gamma + beta


def bert_output(hidden_states, input_tensor, params, *, max_row_tile=256):
    """hidden_states: (B, S, INTER); input_tensor: (B, S, HIDDEN)."""
    b, s, inter = hidden_states.shape
    hidden = input_tensor.shape[-1]
    n = b * s

    x2d = hidden_states.reshape(n, inter)
    r2d = input_tensor.reshape(n, hidden)

    # Pack (bias, gamma, beta) into one (3, HIDDEN) array -> single param DMA.
    p = jnp.concatenate([params["b"], params["gamma"], params["beta"]], axis=0)
    w = params["w"].astype(jnp.bfloat16)

    # Largest row tile <= max_row_tile that divides n (8-row aligned when it can be).
    rt = min(n, max_row_tile)
    while n % rt:
        rt -= 1
    grid = (n // rt,)

    out2d = pl.pallas_call(
        _bert_output_kernel,
        out_shape=jax.ShapeDtypeStruct((n, hidden), jnp.float32),
        grid=grid,
        in_specs=[
            pl.BlockSpec((rt, inter), lambda i: (i, 0)),      # x: row-tiled
            pl.BlockSpec((rt, hidden), lambda i: (i, 0)),     # residual: row-tiled
            pl.BlockSpec((inter, hidden), lambda i: (0, 0)),  # W: resident across grid
            pl.BlockSpec((3, hidden), lambda i: (0, 0)),      # packed bias/gamma/beta
        ],
        out_specs=pl.BlockSpec((rt, hidden), lambda i: (i, 0)),
        compiler_params=pltpu.CompilerParams(
            dimension_semantics=("parallel",)),
    )(x2d, r2d, w, p)

    return out2d.reshape(b, s, hidden)


# ------------------------------- reference --------------------------------
def bert_output_ref(hidden_states, input_tensor, params):
    # Pure-f32 reference of the original module semantics (dropout = eval).
    y = hidden_states @ params["w"] + params["b"]
    y = y + input_tensor
    mean = jnp.mean(y, axis=-1, keepdims=True)
    var = jnp.mean((y - mean) ** 2, axis=-1, keepdims=True)
    yhat = (y - mean) / jnp.sqrt(var + EPS)
    return yhat * params["gamma"] + params["beta"]


# --------------------------------- main ------------------------------------
if __name__ == "__main__":
    key = jax.random.PRNGKey(0)
    k_x, k_res, k_w, k_b, k_g, k_be = jax.random.split(key, 6)

    hidden_states = jax.random.normal(k_x, (B, S, INTER), dtype=jnp.float32)
    input_tensor = jax.random.normal(k_res, (B, S, HIDDEN), dtype=jnp.float32)

    scale = 1.0 / math.sqrt(INTER)
    params = {
        # stored pre-transposed: (in, out), so y = x @ W + b
        "w": jax.random.normal(k_w, (INTER, HIDDEN), dtype=jnp.float32) * scale,
        "b": jax.random.normal(k_b, (1, HIDDEN), dtype=jnp.float32) * 0.02,
        "gamma": 1.0 + 0.1 * jax.random.normal(k_g, (1, HIDDEN), dtype=jnp.float32),
        "beta": 0.1 * jax.random.normal(k_be, (1, HIDDEN), dtype=jnp.float32),
    }

    out = bert_output(hidden_states, input_tensor, params)
    out = jax.block_until_ready(out)

    ref = bert_output_ref(hidden_states, input_tensor, params)
    # Tolerance loosened vs the pure-f32 reference because the MXU operands
    # are bf16 (per perf review); LN renormalization keeps the error small.
    assert jnp.allclose(out, ref, atol=2e-2, rtol=2e-2), "mismatch vs reference"

    print("KERNEL_OK")
</pallas_src>

<mosaic_0001>
module attributes {stable_mosaic.version = 11 : i64} {
  func.func @_bert_output_kernel(%arg0: i32, %arg1: memref<16x128xf32, #tpu.memory_space<vmem>>, %arg2: memref<16x32xf32, #tpu.memory_space<vmem>>, %arg3: memref<128x32xbf16, #tpu.memory_space<vmem>>, %arg4: memref<3x32xf32, #tpu.memory_space<vmem>>, %arg5: memref<16x32xf32, #tpu.memory_space<vmem>>) attributes {dimension_semantics = [#tpu.dimension_semantics<parallel>], iteration_bounds = array<i64: 1>, scalar_prefetch = 0 : i64, scratch_operands = 0 : i64, tpu.core_type = #tpu.core_type<tc>, window_params = [{transform_indices = @transform_0, window_bounds = array<i64: 16, 128>}, {transform_indices = @transform_1, window_bounds = array<i64: 16, 32>}, {pipeline_mode = #tpu.pipeline_mode<synchronous>, transform_indices = @transform_2, window_bounds = array<i64: 128, 32>}, {pipeline_mode = #tpu.pipeline_mode<synchronous>, transform_indices = @transform_3, window_bounds = array<i64: 3, 32>}, {transform_indices = @transform_4, window_bounds = array<i64: 16, 32>}]} {
    %c0 = arith.constant 0 : index
    %c0_0 = arith.constant 0 : index
    %0 = vector.load %arg1[%c0, %c0_0] : memref<16x128xf32, #tpu.memory_space<vmem>>, vector<16x128xf32>
    %1 = arith.truncf %0 : vector<16x128xf32> to vector<16x128xbf16>
    %c0_1 = arith.constant 0 : index
    %c0_2 = arith.constant 0 : index
    %2 = vector.load %arg3[%c0_1, %c0_2] : memref<128x32xbf16, #tpu.memory_space<vmem>>, vector<128x32xbf16>
    %cst = arith.constant dense<0.000000e+00> : vector<16x32xf32>
    %3 = tpu.matmul %1, %2, %cst {dimension_numbers = #tpu.dot_dimension_numbers<[1], [0], [0], [1], [0, 0, 1, 1], [], []>} : vector<16x128xbf16>, vector<128x32xbf16>, vector<16x32xf32> -> vector<16x32xf32>
    %c0_3 = arith.constant 0 : index
    %c0_4 = arith.constant 0 : index
    %4 = vector.load %arg4[%c0_3, %c0_4] : memref<3x32xf32, #tpu.memory_space<vmem>>, vector<1x32xf32>
    %c1 = arith.constant 1 : index
    %c0_5 = arith.constant 0 : index
    %5 = vector.load %arg4[%c1, %c0_5] : memref<3x32xf32, #tpu.memory_space<vmem>>, vector<1x32xf32>
    %c2 = arith.constant 2 : index
    %c0_6 = arith.constant 0 : index
    %6 = vector.load %arg4[%c2, %c0_6] : memref<3x32xf32, #tpu.memory_space<vmem>>, vector<1x32xf32>
    %7 = vector.broadcast %4 : vector<1x32xf32> to vector<16x32xf32>
    %8 = arith.addf %3, %7 : vector<16x32xf32>
    %c0_7 = arith.constant 0 : index
    %c0_8 = arith.constant 0 : index
    %9 = vector.load %arg2[%c0_7, %c0_8] : memref<16x32xf32, #tpu.memory_space<vmem>>, vector<16x32xf32>
    %10 = arith.addf %8, %9 : vector<16x32xf32>
    %cst_9 = arith.constant dense<0.000000e+00> : vector<16xf32>
    %11 = vector.multi_reduction <add>, %10, %cst_9 [1] : vector<16x32xf32> to vector<16xf32>
    %12 = vector.shape_cast %11 : vector<16xf32> to vector<16x1xf32>
    %13 = arith.mulf %10, %10 : vector<16x32xf32>
    %cst_10 = arith.constant dense<0.000000e+00> : vector<16xf32>
    %14 = vector.multi_reduction <add>, %13, %cst_10 [1] : vector<16x32xf32> to vector<16xf32>
    %15 = vector.shape_cast %14 : vector<16xf32> to vector<16x1xf32>
    %cst_11 = arith.constant 3.125000e-02 : f32
    %16 = vector.broadcast %cst_11 : f32 to vector<16x1xf32>
    %17 = arith.mulf %12, %16 : vector<16x1xf32>
    %cst_12 = arith.constant 3.125000e-02 : f32
    %18 = vector.broadcast %cst_12 : f32 to vector<16x1xf32>
    %19 = arith.mulf %15, %18 : vector<16x1xf32>
    %20 = arith.mulf %17, %17 : vector<16x1xf32>
    %21 = arith.subf %19, %20 : vector<16x1xf32>
    %cst_13 = arith.constant 9.99999996E-13 : f32
    %22 = vector.broadcast %cst_13 : f32 to vector<16x1xf32>
    %23 = arith.addf %21, %22 : vector<16x1xf32>
    %24 = math.rsqrt %23 : vector<16x1xf32>
    %25 = vector.broadcast %17 : vector<16x1xf32> to vector<16x32xf32>
    %26 = arith.subf %10, %25 : vector<16x32xf32>
    %27 = vector.broadcast %24 : vector<16x1xf32> to vector<16x32xf32>
    %28 = arith.mulf %26, %27 : vector<16x32xf32>
    %29 = vector.broadcast %5 : vector<1x32xf32> to vector<16x32xf32>
    %30 = arith.mulf %28, %29 : vector<16x32xf32>
    %31 = vector.broadcast %6 : vector<1x32xf32> to vector<16x32xf32>
    %32 = arith.addf %30, %31 : vector<16x32xf32>
    %c0_14 = arith.constant 0 : index
    %c0_15 = arith.constant 0 : index
    %33 = vector.load %arg5[%c0_14, %c0_15] : memref<16x32xf32, #tpu.memory_space<vmem>>, vector<16x32xf32>
    tpu.vector_store %arg5[%c0_14, %c0_15], %32 {strides = array<i32>} : memref<16x32xf32, #tpu.memory_space<vmem>>, vector<16x32xf32>,
    return
  }
  func.func @transform_0(%arg0: i32) -> (i32, i32) {
    %c0_i32 = arith.constant 0 : i32
    %c0_i32_0 = arith.constant 0 : i32
    return %arg0, %c0_i32 : i32, i32
  }
  func.func @transform_1(%arg0: i32) -> (i32, i32) {
    %c0_i32 = arith.constant 0 : i32
    %c0_i32_0 = arith.constant 0 : i32
    return %arg0, %c0_i32 : i32, i32
  }
  func.func @transform_2(%arg0: i32) -> (i32, i32) {
    %c0_i32 = arith.constant 0 : i32
    %c0_i32_0 = arith.constant 0 : i32
    %c0_i32_1 = arith.constant 0 : i32
    return %c0_i32, %c0_i32_0 : i32, i32
  }
  func.func @transform_3(%arg0: i32) -> (i32, i32) {
    %c0_i32 = arith.constant 0 : i32
    %c0_i32_0 = arith.constant 0 : i32
    %c0_i32_1 = arith.constant 0 : i32
    return %c0_i32, %c0_i32_0 : i32, i32
  }
  func.func @transform_4(%arg0: i32) -> (i32, i32) {
    %c0_i32 = arith.constant 0 : i32
    %c0_i32_0 = arith.constant 0 : i32
    return %arg0, %c0_i32 : i32, i32
  }
}

</mosaic_0001>

<bundles_post_ra>
// kernel: tpu_custom_call.1
= control target key start
LH: loop header
LB: loop body
LE: loop exit
PB: predicated region body
PF: predicated region fallthrough
CT: control target
= control target key end

     0   :  { %v278_v1 = vmov 0.0   ;;  %vm279_vm0 = vmmov 0   ;;  %s362_s0 = inlined_call_operand.vmem [shape: f32[16,128], index: 0, kind: input, shape index: {}]   ;;  %s363_s1 = inlined_call_operand.vmem [shape: f32[16,32], index: 1, kind: input, shape index: {}]   ;;  %s364_s2 = inlined_call_operand.vmem [shape: bf16[128,32], index: 2, kind: input, shape index: {}]   ;;  %s365_s3 = inlined_call_operand.vmem [shape: f32[3,32], index: 3, kind: input, shape index: {}]   ;;  %s366_s4 = inlined_call_operand.hbm [shape: f32[16,32], index: 4, kind: output, shape index: {}]  }
   0x1   :  { %v244_v0 = vld [vmem:[%s364_s2 + $0x38] sm:$0xff]   ;;  %219 = vmatprep.subr.bf16.mxu0 %v278_v1  ;;  %v245_v2 = vld [vmem:[%s364_s2 + $0x30] sm:$0xff]   ;;  %235 = vmatprep.mubr.msk.bf16.mxu0 %vm279_vm0, %v278_v1  ;;  %v246_v3 = vld [vmem:[%s364_s2 + $0x28] sm:$0xff]  }
   0x2   :  { %220 = vmatpush3.bf16.msra.mxu0 %v244_v0 }
   0x3   :  { %221 = vmatprep.subr.bf16.mxu0 %v278_v1 }
   0x6   :  { %222 = vmatpush3.bf16.msra.mxu0 %v245_v2 }
   0x7   :  { %223 = vmatprep.subr.bf16.mxu0 %v278_v1 }
   0x8   :  { %9 = vsyncpa [#allocation3], 0  ;;  %v247_v4 = vld [vmem:[%s364_s2 + $0x20] sm:$0xff]   ;;  %v248_v5 = vld [vmem:[%s364_s2 + $0x18] sm:$0xff]   ;;  %vm138_vm1 = vcmask 261120   ;;  %s280_s16 = smov [#allocation2]  }
   0x9   :  { %v249_v6 = vld [vmem:[%s364_s2 + $0x10] sm:$0xff]   ;;  %v250_v7 = vld [vmem:[%s364_s2 + $0x8] sm:$0xff]   ;;  %v251_v8 = vld [vmem:[%s364_s2] sm:$0xff]   ;;  %s188_s17 = sshll.u32 %s280_s16, 4  ;;  %s189_s17 = int_to_ptr.vmem [resolvable:$true] %s188_s17 }
   0xa   :  { %224 = vmatpush3.bf16.msra.mxu0 %v246_v3  ;;  %v19_v9 = vld [vmem:[%s362_s0] sm:$0xff]  ;;  %v20_v10 = vld [vmem:[%s362_s0 + $0x8] sm:$0xff]  ;;  %s256_s18 = scalar_lea.vmem %s189_s17, 256  ;;  %p261_p1 = scmp.lt.s32.totalorder %s189_s17, %s189_s17 }
   0xb   :  { %225 = vmatprep.subr.bf16.mxu0 %v278_v1  ;;  %v21_v11 = vpack.c.bf16 %v20_v10, %v19_v9  ;;  %v199_v12 = vld [vmem:[%s365_s3] ss:$0 sm:$0xff]  ;;  %v135_v19 = vld [vmem:[%s363_s1 + $0x8] sm:$0xff]  ;;  %v208_v45 = vld [vmem:[%s365_s3 + $0x1] ss:$0 sm:$0xff]  ;;  %p257_p0 = scmp.ne.s32.totalorder %s189_s17, %s256_s18  ;;  %p262_p2 = scmp.lt.s32.totalorder %s256_s18, %s256_s18 }
   0xc   :  { %v134_v14 = vld [vmem:[%s363_s1] sm:$0xff] }
   0xd   :  { %v209_v47 = vld [vmem:[%s365_s3 + $0x2] ss:$0 sm:$0xff]  ;;  %p263_p3 = por %p262_p2, %p261_p1 }
   0xe   :  { %226 = vmatpush3.bf16.msra.mxu0 %v247_v4 }
   0xf   :  { %227 = vmatprep.subr.bf16.mxu0 %v278_v1  ;;  %p264_p4 = pnand %p263_p3, %p257_p0 }
  0x12   :  { %228 = vmatpush3.bf16.msra.mxu0 %v248_v5 }
  0x13   :  { %229 = vmatprep.subr.bf16.mxu0 %v278_v1 }
  0x16   :  { %230 = vmatpush3.bf16.msra.mxu0 %v249_v6 }
  0x17   :  { %231 = vmatprep.subr.bf16.mxu0 %v278_v1 }
  0x1a   :  { %232 = vmatpush3.bf16.msra.mxu0 %v250_v7 }
  0x1b   :  { %233 = vmatprep.subr.bf16.mxu0 %v278_v1 }
  0x1e   :  { %234 = vmatpush3.bf16.msra.mxu0 %v251_v8 }
  0x21   :  { %236 = vmatmul.mubr.bf16.vlgmr.msra.gmra.mxu0 %v21_v11 }
  0xe1   :  { %v127_v13 = vpop.f32.mrf.mxu0 }
  0xe2   :  { %v128_v15 = vadd.f32 %v199_v12, %v127_v13 }
  0xe3   :  { %v237_v16 = vpop.f32.mrf.mxu0 }
  0xe4   :  { %v136_v17 = vadd.f32 %v134_v14, %v128_v15 }
  0xe5   :  { %v130_v18 = vpop.f32.mrf.mxu0 }
  0xe6   :  { %v131_v20 = vadd.f32 %v199_v12, %v130_v18  ;;  %v139_v21 = vsel %vm138_vm1, %v136_v17, 0.0  ;;  %v145_v22 = vmul.f32 %v136_v17, %v136_v17 }
  0xe7   :  { %140 = vadd.xlane.f32.xlu0 %v139_v21  ;;  %v238_v23 = vpop.f32.mrf.mxu0 }
  0xe8   :  { %v137_v24 = vadd.f32 %v135_v19, %v131_v20  ;;  %v147_v25 = vsel %vm138_vm1, %v145_v22, 0.0 }
  0xe9   :  { %148 = vadd.xlane.f32.xlu1 %v147_v25 }
  0xea   :  { %v142_v26 = vsel %vm138_vm1, %v137_v24, 0.0  ;;  %v146_v27 = vmul.f32 %v137_v24, %v137_v24 }
  0xeb   :  { %143 = vadd.xlane.f32.xlu0 %v142_v26 }
  0xec   :  { %v150_v28 = vsel %vm138_vm1, %v146_v27, 0.0 }
  0xed   :  { %151 = vadd.xlane.f32.xlu1 %v150_v28 }
 0x170   :  { %v141_v29 = vpop.xlane.xlu0 %140 }
 0x171   :  { %v153_v30 = vmul.f32 0.03125, %v141_v29 }
 0x172   :  { %v149_v31 = vpop.xlane.xlu1 %148 }
 0x173   :  { %v157_v32 = vmul.f32 %v153_v30, %v153_v30  ;;  %v155_v33 = vmul.f32 0.03125, %v149_v31  ;;  %v165_v43 = vsub.f32 %v136_v17, %v153_v30 }
 0x174   :  { %v144_v34 = vpop.xlane.xlu0 %143 }
 0x175   :  { %v159_v35 = vsub.f32 %v155_v33, %v157_v32  ;;  %v154_v36 = vmul.f32 0.03125, %v144_v34 }
 0x176   :  { %v152_v37 = vpop.xlane.xlu1 %151 }
 0x177   :  { %v161_v38 = vadd.f32 1e-12, %v159_v35  ;;  %v158_v39 = vmul.f32 %v154_v36, %v154_v36  ;;  %v156_v40 = vmul.f32 0.03125, %v152_v37  ;;  %v166_v48 = vsub.f32 %v137_v24, %v154_v36 }
 0x179   :  { %252 = vrsqrt.f32 %v161_v38  ;;  %v160_v41 = vsub.f32 %v156_v40, %v158_v39 }
 0x17b   :  { %v162_v42 = vadd.f32 1e-12, %v160_v41 }
 0x17d   :  { %254 = vrsqrt.f32 %v162_v42 }
 0x186   :  { %v253_v44 = vpop.eup %252 }
 0x187   :  { %v167_v46 = vmul.f32 %v253_v44, %v165_v43 }
 0x189   :  { %v173_v49 = vmul.f32 %v208_v45, %v167_v46 }
 0x18a   :  { %v255_v50 = vpop.eup %254 }
 0x18b   :  { %v168_v51 = vmul.f32 %v255_v50, %v166_v48  ;;  %v179_v52 = vadd.f32 %v209_v47, %v173_v49 }
 0x18d   :  { %v174_v53 = vmul.f32 %v208_v45, %v168_v51  ;;  %181 = vst.msk [vmem:[#allocation2] sm:$0xff] %vm138_vm1, %v179_v52 }
 0x18f   :  { %v180_v54 = vadd.f32 %v209_v47, %v174_v53 }
 0x191   :  { %182 = vst.msk [vmem:[#allocation2 + $0x8] sm:$0xff] %vm138_vm1, %v180_v54 }
 0x192   :  { %267 = shalt.err (!%p264_p4)
}
 0x193   :  { %s281_s3 = smov 128   ;;  %s282_s19 = smov 8  }
 0x194   :  { %194 = dma.vmem_to_hbm [thread:$0]  %s189_s17, 256, %s366_s4, [#allocation3], %s281_s3, %s281_s3, %s282_s19  }
 0x195   :  { %276 = dma.done.wait [#allocation3], 256  }
 0x196   :  { %277 = vsyncadd [#allocation3], 4294967040 }
 0x197   :  { %198 = vsyncpa [#allocation3], 1 }

</bundles_post_ra>
